<compile_context>
chip_gen: v6e
topology: v6e:2x2x1
jax: 0.10.0
libtpu: 0.0.40
codegen_flags: <defaults>
</compile_context>

<pallas_src>
import functools

import jax
import jax.numpy as jnp
from jax.experimental import pallas as pl
from jax.experimental.pallas import tpu as pltpu


def _round_up(x, m):
    return ((x + m - 1) // m) * m


def _length_pred_loss_kernel(logits_ref, delta_ref, out_ref, *, batch, block_b):
    step = pl.program_id(0)

    logits = logits_ref[...].astype(jnp.float32)              # [TB, C]
    delta = delta_ref[...]                                    # [TB, 1] int32
    tb, c = logits.shape

    # Numerically stable, fused cross-entropy on shifted logits:
    #   loss_i = log(sum_j exp(l_ij - m_i)) - (l_i[delta_i] - m_i)
    row_max = jnp.max(logits, axis=1, keepdims=True)          # [TB, 1]
    shifted = logits - row_max                                # [TB, C]

    col = jax.lax.broadcasted_iota(jnp.int32, (tb, c), 1)     # [TB, C]
    onehot = col == delta                                     # [TB, C] bool

    sum_exp = jnp.sum(jnp.exp(shifted), axis=1, keepdims=True)           # [TB, 1]
    tgt_shift = jnp.sum(jnp.where(onehot, shifted, 0.0),
                        axis=1, keepdims=True)                           # [TB, 1]
    per_row = jnp.log(sum_exp) - tgt_shift                               # [TB, 1]

    # Mask rows past the real batch (covers the ragged last tile, whose
    # out-of-bounds rows hold unspecified data; any NaN/Inf there is per-row
    # and is discarded by this select before the reduction).
    row_id = step * block_b + jax.lax.broadcasted_iota(jnp.int32, (tb, 1), 0)
    valid = row_id < batch
    partial = jnp.sum(jnp.where(valid, per_row, 0.0))                    # scalar

    # Lane-dense per-tile partial: broadcast the scalar over one (8,128) tile.
    out_ref[...] = jnp.full(out_ref.shape, partial, dtype=out_ref.dtype)


def length_prediction_loss(logits, src_mask, tgt_mask, *,
                           max_delta=50, block_b=8192):
    """Pallas implementation of LengthPredictionLoss.forward.

    Returns {'length_prediction_loss': scalar float32}.
    """
    B, C = logits.shape
    assert C == 2 * max_delta, "logits must have 2*max_delta classes"

    # --- Wrapper-side prep (tiny O(B*S) reduce; keeps masks out of the kernel).
    src_lens = jnp.sum(src_mask.astype(jnp.int32), axis=1)
    tgt_lens = jnp.sum(tgt_mask.astype(jnp.int32), axis=1)
    delta = jnp.clip(tgt_lens - src_lens + max_delta,
                     0, 2 * max_delta - 1).astype(jnp.int32)             # [B]
    delta = delta.reshape(B, 1)

    # Batch tiling: TB multiple of 8, capped at block_b.  No padding of the
    # inputs: cdiv grid + in-kernel row mask handle the ragged last tile, and
    # the class axis uses a full-extent (unpadded) block.
    tb = min(_round_up(block_b, 8), _round_up(B, 8))
    num_tiles = pl.cdiv(B, tb)

    kernel = functools.partial(_length_pred_loss_kernel, batch=B, block_b=tb)

    partials = pl.pallas_call(
        kernel,
        out_shape=jax.ShapeDtypeStruct((num_tiles, 8, 128), jnp.float32),
        grid_spec=pltpu.PrefetchScalarGridSpec(
            num_scalar_prefetch=0,
            grid=(num_tiles,),
            in_specs=[
                pl.BlockSpec((tb, C), lambda i: (i, 0)),   # logits tile (HBM dtype)
                pl.BlockSpec((tb, 1), lambda i: (i, 0)),   # delta tile
            ],
            out_specs=pl.BlockSpec((1, 8, 128), lambda i: (i, 0, 0)),
        ),
        compiler_params=pltpu.CompilerParams(
            # Independent per-tile partial sums -> shard across TCs (v7x).
            dimension_semantics=("parallel",),
            # Default scoped VMEM is ample: f32 (8192,100) block is ~3.2 MiB,
            # ~6.4 MiB double-buffered (< 16 MiB even on v5e).
        ),
    )(logits, delta)

    loss = jnp.sum(partials[:, 0, 0]) / float(B)
    return {'length_prediction_loss': loss}


def _reference(logits, src_mask, tgt_mask, max_delta=50):
    """Pure-JAX reference for validation."""
    src_lens = jnp.sum(src_mask.astype(jnp.float32), axis=1)
    tgt_lens = jnp.sum(tgt_mask.astype(jnp.float32), axis=1)
    delta = jnp.clip(tgt_lens - src_lens + max_delta,
                     0, 2 * max_delta - 1).astype(jnp.int32)
    logp = jax.nn.log_softmax(logits.astype(jnp.float32), axis=-1)
    nll = -jnp.take_along_axis(logp, delta[:, None], axis=1)[:, 0]
    return jnp.mean(nll)


if __name__ == "__main__":
    key = jax.random.PRNGKey(0)
    k1, k2, k3 = jax.random.split(key, 3)

    max_delta = 50
    C = 2 * max_delta
    S_SRC = 16      # source sequence length
    S_TGT = 24      # target sequence length

    # --- Test 1: small aligned batch, f32 logits --------------------------
    B = 8
    logits = jax.random.normal(k1, (B, C), dtype=jnp.float32)
    src_lens = jax.random.randint(k2, (B,), 1, S_SRC + 1)
    tgt_lens = jax.random.randint(k3, (B,), 1, S_TGT + 1)
    src_mask = (jnp.arange(S_SRC)[None, :] < src_lens[:, None]).astype(jnp.float32)
    tgt_mask = (jnp.arange(S_TGT)[None, :] < tgt_lens[:, None]).astype(jnp.float32)

    out = length_prediction_loss(logits, src_mask, tgt_mask, max_delta=max_delta)
    loss = jax.block_until_ready(out['length_prediction_loss'])
    ref = _reference(logits, src_mask, tgt_mask, max_delta=max_delta)
    assert jnp.allclose(loss, ref, atol=1e-4, rtol=1e-4), (loss, ref)

    # --- Test 2: ragged batch + multi-tile parallel grid -------------------
    B2 = 13
    logits2 = jax.random.normal(k1, (B2, C), dtype=jnp.float32)
    src_lens2 = jax.random.randint(k2, (B2,), 1, S_SRC + 1)
    tgt_lens2 = jax.random.randint(k3, (B2,), 1, S_TGT + 1)
    src_mask2 = (jnp.arange(S_SRC)[None, :] < src_lens2[:, None]).astype(jnp.float32)
    tgt_mask2 = (jnp.arange(S_TGT)[None, :] < tgt_lens2[:, None]).astype(jnp.float32)

    out2 = length_prediction_loss(logits2, src_mask2, tgt_mask2,
                                  max_delta=max_delta, block_b=8)
    loss2 = jax.block_until_ready(out2['length_prediction_loss'])
    ref2 = _reference(logits2, src_mask2, tgt_mask2, max_delta=max_delta)
    assert jnp.allclose(loss2, ref2, atol=1e-4, rtol=1e-4), (loss2, ref2)

    # --- Test 3: bf16 logits stay bf16 through HBM (kernel casts per tile) -
    out3 = length_prediction_loss(logits.astype(jnp.bfloat16), src_mask, tgt_mask,
                                  max_delta=max_delta)
    loss3 = jax.block_until_ready(out3['length_prediction_loss'])
    ref3 = _reference(logits.astype(jnp.bfloat16), src_mask, tgt_mask,
                      max_delta=max_delta)
    assert jnp.allclose(loss3, ref3, atol=3e-2, rtol=3e-2), (loss3, ref3)

    print("KERNEL_OK")
</pallas_src>

<mosaic_0001>
module attributes {stable_mosaic.version = 11 : i64} {
  func.func @_length_pred_loss_kernel(%arg0: i32, %arg1: memref<8x100xf32, #tpu.memory_space<vmem>>, %arg2: memref<8x1xi32, #tpu.memory_space<vmem>>, %arg3: memref<1x8x128xf32, #tpu.memory_space<vmem>>) attributes {dimension_semantics = [#tpu.dimension_semantics<parallel>], iteration_bounds = array<i64: 1>, scalar_prefetch = 0 : i64, scratch_operands = 0 : i64, tpu.core_type = #tpu.core_type<tc>, window_params = [{transform_indices = @transform_0, window_bounds = array<i64: 8, 100>}, {transform_indices = @transform_1, window_bounds = array<i64: 8, 1>}, {transform_indices = @transform_2, window_bounds = array<i64: 1, 8, 128>}]} {
    %c0 = arith.constant 0 : index
    %c0_0 = arith.constant 0 : index
    %0 = vector.load %arg1[%c0, %c0_0] : memref<8x100xf32, #tpu.memory_space<vmem>>, vector<8x100xf32>
    %c0_1 = arith.constant 0 : index
    %c0_2 = arith.constant 0 : index
    %1 = vector.load %arg2[%c0_1, %c0_2] : memref<8x1xi32, #tpu.memory_space<vmem>>, vector<8x1xi32>
    %cst = arith.constant dense<0xFF800000> : vector<8xf32>
    %2 = vector.multi_reduction <maximumf>, %0, %cst [1] : vector<8x100xf32> to vector<8xf32>
    %3 = vector.shape_cast %2 : vector<8xf32> to vector<8x1xf32>
    %4 = vector.broadcast %3 : vector<8x1xf32> to vector<8x100xf32>
    %5 = arith.subf %0, %4 : vector<8x100xf32>
    %6 = tpu.iota {dimensions = array<i32: 1>} : vector<8x100xi32>
    %7 = vector.broadcast %1 : vector<8x1xi32> to vector<8x100xi32>
    %8 = arith.cmpi eq, %6, %7 : vector<8x100xi32>
    %9 = math.exp %5 : vector<8x100xf32>
    %cst_3 = arith.constant dense<0.000000e+00> : vector<8xf32>
    %10 = vector.multi_reduction <add>, %9, %cst_3 [1] : vector<8x100xf32> to vector<8xf32>
    %11 = vector.shape_cast %10 : vector<8xf32> to vector<8x1xf32>
    %cst_4 = arith.constant 0.000000e+00 : f32
    %12 = vector.broadcast %cst_4 : f32 to vector<8x100xf32>
    %13 = arith.select %8, %5, %12 : vector<8x100xi1>, vector<8x100xf32>
    %cst_5 = arith.constant dense<0.000000e+00> : vector<8xf32>
    %14 = vector.multi_reduction <add>, %13, %cst_5 [1] : vector<8x100xf32> to vector<8xf32>
    %15 = vector.shape_cast %14 : vector<8xf32> to vector<8x1xf32>
    %16 = math.log %11 : vector<8x1xf32>
    %17 = arith.subf %16, %15 : vector<8x1xf32>
    %c8_i32 = arith.constant 8 : i32
    %18 = arith.muli %arg0, %c8_i32 : i32
    %19 = tpu.iota {dimensions = array<i32: 0>} : vector<8x1xi32>
    %20 = vector.broadcast %18 : i32 to vector<8x1xi32>
    %21 = arith.addi %20, %19 : vector<8x1xi32>
    %c8_i32_6 = arith.constant 8 : i32
    %22 = vector.broadcast %c8_i32_6 : i32 to vector<8x1xi32>
    %23 = arith.cmpi slt, %21, %22 : vector<8x1xi32>
    %cst_7 = arith.constant 0.000000e+00 : f32
    %24 = vector.broadcast %cst_7 : f32 to vector<8x1xf32>
    %25 = arith.select %23, %17, %24 : vector<8x1xi1>, vector<8x1xf32>
    %26 = vector.shape_cast %25 : vector<8x1xf32> to vector<1x8x1xf32>
    %cst_8 = arith.constant dense<0.000000e+00> : vector<1xf32>
    %27 = vector.multi_reduction <add>, %26, %cst_8 [1, 2] : vector<1x8x1xf32> to vector<1xf32>
    %28 = vector.shape_cast %27 : vector<1xf32> to vector<1x1x1xf32>
    %29 = vector.extract %28[0, 0, 0] : f32 from vector<1x1x1xf32>
    %30 = vector.broadcast %29 : f32 to vector<1x8x128xf32>
    %c0_9 = arith.constant 0 : index
    %c0_10 = arith.constant 0 : index
    %c0_11 = arith.constant 0 : index
    %31 = vector.load %arg3[%c0_9, %c0_10, %c0_11] : memref<1x8x128xf32, #tpu.memory_space<vmem>>, vector<1x8x128xf32>
    tpu.vector_store %arg3[%c0_9, %c0_10, %c0_11], %30 {strides = array<i32>} : memref<1x8x128xf32, #tpu.memory_space<vmem>>, vector<1x8x128xf32>,
    return
  }
  func.func @transform_0(%arg0: i32) -> (i32, i32) {
    %c0_i32 = arith.constant 0 : i32
    %c0_i32_0 = arith.constant 0 : i32
    return %arg0, %c0_i32 : i32, i32
  }
  func.func @transform_1(%arg0: i32) -> (i32, i32) {
    %c0_i32 = arith.constant 0 : i32
    %c0_i32_0 = arith.constant 0 : i32
    return %arg0, %c0_i32 : i32, i32
  }
  func.func @transform_2(%arg0: i32) -> (i32, i32, i32) {
    %c0_i32 = arith.constant 0 : i32
    %c0_i32_0 = arith.constant 0 : i32
    %c0_i32_1 = arith.constant 0 : i32
    return %arg0, %c0_i32, %c0_i32_0 : i32, i32, i32
  }
}

</mosaic_0001>

<bundles_post_ra>
// kernel: tpu_custom_call.1
= control target key start
LH: loop header
LB: loop body
LE: loop exit
PB: predicated region body
PF: predicated region fallthrough
CT: control target
= control target key end

     0   :  { %vm14_vm0 = vcmask 818176   ;;  %s131_s0 = inlined_call_operand.vmem [shape: f32[8,100], index: 0, kind: input, shape index: {}]   ;;  %s132_s1 = inlined_call_operand.vmem [shape: s32[8,1], index: 1, kind: input, shape index: {}]   ;;  %s133_s2 = inlined_call_operand.hbm [shape: f32[1,8,128], index: 2, kind: output, shape index: {}]  }
   0x1   :  { %v12_v0 = vld [vmem:[%s131_s0] sm:$0xff] }
   0x2   :  { %7 = vsyncpa [#allocation3], 0  ;;  %v15_v1 = vsel %vm14_vm0, %v12_v0, -inf  ;;  %v102_v2 = vmov 0   ;;  %v13_v3 = vld [vmem:[%s132_s1] sm:$0xff]  ;;  %v19_v7 = vlaneseq  ;;  %vm44_vm2 = vcmask 7168  }
   0x3   :  { %75 = vset.pattern.permute.xlu0 %v102_v2  ;;  %s103_s0 = smov [#allocation2]  }
   0x4   :  { %16 = vmax.xlane.f32.xlu0 %v15_v1  ;;  %v20_v8 = vand.u32 127, %v19_v7  ;;  %s63_s1 = sshll.u32 %s103_s0, 4  ;;  %s64_s1 = int_to_ptr.vmem [resolvable:$true] %s63_s1 }
   0x5   :  { %s80_s14 = scalar_lea.vmem %s64_s1, 128  ;;  %p85_p1 = scmp.lt.s32.totalorder %s64_s1, %s64_s1 }
   0x6   :  { %p81_p0 = scmp.ne.s32.totalorder %s64_s1, %s80_s14  ;;  %p86_p2 = scmp.lt.s32.totalorder %s80_s14, %s80_s14 }
   0x8   :  { %p87_p3 = por %p86_p2, %p85_p1 }
   0xa   :  { %p88_p4 = pnand %p87_p3, %p81_p0 }
  0x1a   :  { %22 = vperm.xlu0 %75, %v13_v3  }
  0x8d   :  { %v17_v4 = vpop.xlane.xlu0 %16 }
  0x8e   :  { %v18_v5 = vsub.f32 %v12_v0, %v17_v4 }
  0x90   :  { %v25_v6 = vmul.f32 1.442695, %v18_v5 }
  0x92   :  { %76 = vpow2.f32 %v25_v6 }
  0x95   :  { %v23_v9 = vpop.permute.xlu0 %22 }
  0x96   :  { %vm24_vm1 = vcmp.eq.s32.totalorder %v20_v8, %v23_v9 }
  0x97   :  { %v30_v12 = vsel %vm24_vm1, %v18_v5, 0.0 }
  0x98   :  { %v31_v13 = vsel %vm14_vm0, %v30_v12, 0.0 }
  0x9f   :  { %v77_v10 = vpop.eup %76 }
  0xa0   :  { %v27_v11 = vsel %vm14_vm0, %v77_v10, 0.0 }
  0xa1   :  { %28 = vadd.xlane.f32.xlu1 %v27_v11 }
  0xa5   :  { %32 = vadd.xlane.f32.xlu1 %v31_v13 }
 0x12a   :  { %v29_v14 = vpop.xlane.xlu1 %28 }
 0x12b   :  { %78 = vlog2.f32 %v29_v14 }
 0x12e   :  { %v33_v17 = vpop.xlane.xlu1 %32 }
 0x138   :  { %v79_v15 = vpop.eup %78 }
 0x139   :  { %v35_v16 = vmul.f32 0.6931472, %v79_v15 }
 0x13b   :  { %v36_v18 = vsub.f32 %v35_v16, %v33_v17 }
 0x13d   :  { %v45_v19 = vsel %vm44_vm2, %v36_v18, 0.0 }
 0x13e   :  { %46 = vadd.xlane.f32.xlu1 %v45_v19 }
 0x1c7   :  { %v47_v20 = vpop.xlane.xlu1 %46 }
 0x1c8   :  { %v48_v21 = vrot.slane %v47_v20, 4 }
 0x1ca   :  { %v49_v22 = vadd.f32 %v48_v21, %v47_v20 }
 0x1cc   :  { %v50_v23 = vrot.slane %v49_v22, 2 }
 0x1ce   :  { %v51_v24 = vadd.f32 %v50_v23, %v49_v22 }
 0x1d0   :  { %v52_v25 = vrot.slane %v51_v24, 1 }
 0x1d2   :  { %v53_v26 = vadd.f32 %v52_v25, %v51_v24 }
 0x1d4   :  { %71 = vpush %v53_v26 }
 0x205   :  { %s72_s13 = spop %71 }
 0x206   :  { %v55_v27 = vstv %s72_s13 }
 0x207   :  { %56 = vst [vmem:[#allocation2] sm:$0xff] %v55_v27 }
 0x208   :  { %91 = shalt.err (!%p88_p4)
}
 0x209   :  { %66 = dma.vmem_to_hbm [thread:$0]  %s64_s1, 128, %s133_s2, [#allocation3]  }
 0x20a   :  { %100 = dma.done.wait [#allocation3], 128  }
 0x20b   :  { %101 = vsyncadd [#allocation3], 4294967168 }
 0x20c   :  { %70 = vsyncpa [#allocation3], 1 }

</bundles_post_ra>
